<compile_context>
chip_gen: v7x
topology: tpu7x:2x2x1
jax: 0.10.0
libtpu: 0.0.40
codegen_flags: <defaults>
</compile_context>

<pallas_src>
import functools

import jax
import jax.numpy as jnp
from jax.experimental import pallas as pl
from jax.experimental.pallas import tpu as pltpu


def _csltal_loss_kernel(xe_ref, xo_ref, cls_lbl_ref, out_ref,
                        acc_align_ref, acc_smooth_ref, acc_l1_ref, carry_ref,
                        *, alpha, beta, gamma_over_t, inv_num_feat, n_cls,
                        align_active, padded, last_block_valid):
    """One T-block of the fused reduction.

    xe_ref / xo_ref : (M, TB) even-row / odd-row planes of this time block.
    cls_lbl_ref     : (2, n_cls) [classification probs ; repeated labels].
    out_ref         : (5,) SMEM -> [total, align, class, smooth, sparsity].
    acc_*_ref       : f32 VMEM elementwise accumulators (reduced once at end).
    carry_ref       : (M, 2) f32 VMEM last column of previous block per plane.
    """
    k = pl.program_id(0)
    nk = pl.num_programs(0)

    xe = xe_ref[...].astype(jnp.float32)            # (M, TB)
    xo = xo_ref[...].astype(jnp.float32)            # (M, TB)
    tb = xe.shape[-1]

    @pl.when(k == 0)
    def _init():
        acc_align_ref[...] = jnp.zeros_like(acc_align_ref)
        acc_smooth_ref[...] = jnp.zeros_like(acc_smooth_ref)
        acc_l1_ref[...] = jnp.zeros_like(acc_l1_ref)
        # Makes the boundary diff of the very first column exactly zero.
        carry_ref[:, 0:1] = xe[:, 0:1]
        carry_ref[:, 1:2] = xo[:, 0:1]

    # --- sparsity: sum_i ||a_i||_1 (zero pad rows / columns contribute 0) ----
    acc_l1_ref[...] = acc_l1_ref[...] + jnp.abs(xe) + jnp.abs(xo)

    # --- smoothness: sum_i sum_t (a_t - a_{t+1})^2 ---------------------------
    # Circular neighbour diff on the XLU (direction-invariant under the sum of
    # squares), then subtract the wrap term and add the true cross-block
    # boundary term on column 0.
    de = xe - pltpu.roll(xe, shift=1, axis=1)
    do = xo - pltpu.roll(xo, shift=1, axis=1)
    acc_smooth_ref[...] = acc_smooth_ref[...] + de * de + do * do

    e0, el = xe[:, 0:1], xe[:, tb - 1:tb]
    o0, ol = xo[:, 0:1], xo[:, tb - 1:tb]
    bnd_e = carry_ref[:, 0:1] - e0
    bnd_o = carry_ref[:, 1:2] - o0
    wrap_e = el - e0
    wrap_o = ol - o0
    acc_smooth_ref[:, 0:1] = (acc_smooth_ref[:, 0:1]
                              + bnd_e * bnd_e + bnd_o * bnd_o
                              - wrap_e * wrap_e - wrap_o * wrap_o)
    carry_ref[:, 0:1] = el
    carry_ref[:, 1:2] = ol

    if padded:
        # The last real column pairs with the first (zero) pad column inside
        # the circular sum of the final block: remove that spurious term.
        @pl.when(k == nk - 1)
        def _pad_fix():
            lv = last_block_valid
            le = xe[:, lv - 1:lv]
            lo = xo[:, lv - 1:lv]
            acc_smooth_ref[:, 0:1] = (acc_smooth_ref[:, 0:1]
                                      - le * le - lo * lo)

    # --- align: sum_p sum_t (a_even - a_odd)^2 (elementwise across planes) ---
    if align_active:
        pd = xe - xo
        acc_align_ref[...] = acc_align_ref[...] + pd * pd

    # --- finalize: one cross-lane reduce + BCE + combined loss ---------------
    @pl.when(k == nk - 1)
    def _finalize():
        if align_active:
            align_loss = gamma_over_t * jnp.sum(acc_align_ref[...])  # gamma/T
        else:
            align_loss = jnp.float32(0.0)
        smooth_loss = alpha * jnp.sum(acc_smooth_ref[...])
        sparsity_loss = beta * jnp.sum(acc_l1_ref[...])

        cl = cls_lbl_ref[...].astype(jnp.float32)                    # (2, n)
        prob = cl[0:1, :]
        y = cl[1:2, :]
        log_p = jnp.maximum(jnp.log(prob), -100.0)                   # torch BCE clamp
        log_1mp = jnp.maximum(jnp.log(1.0 - prob), -100.0)
        class_loss = (-jnp.sum(y * log_p + (1.0 - y) * log_1mp)) * (1.0 / n_cls)

        out_ref[0] = ((align_loss + class_loss + smooth_loss + sparsity_loss)
                      * inv_num_feat)                                # / len(features)
        out_ref[1] = align_loss
        out_ref[2] = class_loss
        out_ref[3] = smooth_loss
        out_ref[4] = sparsity_loss


def _choose_t_block(n_half, t, itemsize, max_t_block, vmem_budget_bytes):
    """Pick (t_block, t_padded): lane-aligned block size + padded T.

    Budget: 2 double-buffered input planes (native dtype) + 3 f32 accumulators
    per column fit in `vmem_budget_bytes` (conservative wrt scoped-VMEM
    defaults: 16 MiB on v5e, 32 MiB on v6e/v7x; v7x has 64 MiB physical).
    """
    max_t_block = max(128, (int(max_t_block) // 128) * 128)
    per_col = n_half * (4 * itemsize + 3 * 4) + 64
    cap = (int(vmem_budget_bytes) // per_col) // 128 * 128
    cap = max(128, min(cap, max_t_block))
    t_padded = ((t + 127) // 128) * 128            # lane-align T
    if t_padded <= cap:
        return t_padded, t_padded                  # single block
    tb = cap
    while tb > 128 and t_padded % tb:              # prefer a divisor of T
        tb -= 128
    if t_padded % tb:                              # none found: pad up to cap
        tb = cap
        t_padded = ((t_padded + tb - 1) // tb) * tb
    return tb, t_padded


def csltal_loss(attention, classification, video_label, features, epoch, *,
                alpha, beta, gamma, delay_align, num_samples,
                detach=False, pseudo_label=False,
                max_t_block=2048, vmem_budget_bytes=8 * 1024 * 1024):
    """Fused CSLTALLoss forward.

    attention: (N, T) float (bf16 ok, cast in-kernel); classification: (N,);
    video_label: (B,) with N = B * num_samples; features: (N, D) (only
    len(features) is used).  `epoch` must be a static Python int.
    """
    if pseudo_label:
        raise NotImplementedError("pseudo_label path not implemented")   # TODO(synk)
    if num_samples > 2:
        raise NotImplementedError("num_samples > 2 (pdist) not implemented")  # TODO(synk)
    del detach  # only changes the backward graph; forward numerics identical
    epoch = int(epoch)              # static: selects the align branch

    n, t = attention.shape
    num_feat = int(features.shape[0])

    # glue: repeat_interleave of video labels + pack with the probabilities
    # into a single (2, N) input (one DMA).
    video_label_repeat = jnp.repeat(video_label.astype(jnp.float32), num_samples)
    cls_lbl = jnp.stack(
        [jnp.reshape(classification.astype(jnp.float32), (n,)),
         jnp.reshape(video_label_repeat, (n,))], axis=0)

    align_active = (num_samples == 2) and (epoch >= delay_align)
    gamma_over_t = (float(gamma) / float(t)) if align_active else 0.0

    # Pair rows: pad to an even row count (zero rows are exact no-ops for all
    # terms), then view (N, Tp) as (N/2, 2*Tp) so the even/odd planes of each
    # time block are two dense windows of the same HBM array.
    n_even = n + (n % 2)
    n_half = n_even // 2
    t_block, t_padded = _choose_t_block(n_half, t, attention.dtype.itemsize,
                                        max_t_block, vmem_budget_bytes)
    att = attention
    if n_even != n or t_padded != t:
        att = jnp.pad(att, ((0, n_even - n), (0, t_padded - t)))
    att2 = att.reshape(n_half, 2 * t_padded)        # free row-major reshape
    nk = t_padded // t_block
    padded_t = t_padded != t
    last_block_valid = t - (nk - 1) * t_block

    kernel = functools.partial(
        _csltal_loss_kernel,
        alpha=float(alpha), beta=float(beta), gamma_over_t=gamma_over_t,
        inv_num_feat=1.0 / float(num_feat), n_cls=int(n),
        align_active=bool(align_active), padded=bool(padded_t),
        last_block_valid=int(last_block_valid))

    acc_align_shape = (n_half, t_block) if align_active else (8, 128)

    parts = pl.pallas_call(
        kernel,
        out_shape=jax.ShapeDtypeStruct((5,), jnp.float32),
        grid=(nk,),
        in_specs=[
            # even-row plane / odd-row plane of time block k: two dense
            # windows of the same (N/2, 2*Tp) array.
            pl.BlockSpec((n_half, t_block), lambda k: (0, k)),
            pl.BlockSpec((n_half, t_block), lambda k, _nk=nk: (0, k + _nk)),
            # classification + labels: tiny, whole-array resident in VMEM.
            pl.BlockSpec(memory_space=pltpu.VMEM),
        ],
        out_specs=pl.BlockSpec(memory_space=pltpu.SMEM),
        scratch_shapes=[
            pltpu.VMEM(acc_align_shape, jnp.float32),     # align partials
            pltpu.VMEM((n_half, t_block), jnp.float32),   # smooth partials
            pltpu.VMEM((n_half, t_block), jnp.float32),   # sparsity partials
            pltpu.VMEM((n_half, 2), jnp.float32),         # boundary carry
        ],
        compiler_params=pltpu.CompilerParams(
            dimension_semantics=("arbitrary",)),          # T axis is a reduction
    )(att2, att2, cls_lbl)

    loss = parts[0]
    losses = {
        "align_loss": parts[1],
        "class_loss": parts[2],
        "smooth_loss": parts[3],
        "sparsity_loss": parts[4],
    }
    return loss, losses


def _reference(attention, classification, video_label, features, epoch, *,
               alpha, beta, gamma, delay_align, num_samples):
    att = attention.astype(jnp.float32)
    lbl = jnp.repeat(video_label.astype(jnp.float32), num_samples)
    smooth = alpha * jnp.sum((att[:, :-1] - att[:, 1:]) ** 2)
    sparsity = beta * jnp.sum(jnp.abs(att))
    if num_samples > 1 and epoch >= delay_align:
        a_even, a_odd = att[0::2], att[1::2]
        align = gamma * jnp.sum(jnp.mean((a_even - a_odd) ** 2, axis=1))
    else:
        align = jnp.float32(0.0)
    p = jnp.reshape(classification.astype(jnp.float32), (-1,))
    log_p = jnp.maximum(jnp.log(p), -100.0)
    log_1mp = jnp.maximum(jnp.log(1.0 - p), -100.0)
    class_loss = -jnp.mean(lbl * log_p + (1.0 - lbl) * log_1mp)
    loss = (align + class_loss + smooth + sparsity) / features.shape[0]
    return loss, align, class_loss, smooth, sparsity


if __name__ == "__main__":
    hp_common = dict(alpha=1e-3, beta=1e-4, gamma=1.0)

    def run_case(case_id, *, batch, num_samples, t, epoch, delay_align,
                 max_t_block=2048):
        n = batch * num_samples
        d = 32
        keys = jax.random.split(
            jax.random.fold_in(jax.random.PRNGKey(0), case_id), 4)
        attention = jax.nn.sigmoid(jax.random.normal(keys[0], (n, t), jnp.float32))
        classification = jax.nn.sigmoid(jax.random.normal(keys[1], (n,), jnp.float32))
        video_label = (jax.random.uniform(keys[2], (batch,)) > 0.5).astype(jnp.float32)
        features = jax.random.normal(keys[3], (n, d), jnp.float32)

        hp = dict(hp_common, delay_align=delay_align, num_samples=num_samples)
        loss, losses = csltal_loss(attention, classification, video_label,
                                   features, epoch, max_t_block=max_t_block, **hp)
        loss = jax.block_until_ready(loss)

        ref = _reference(attention, classification, video_label, features,
                         epoch, **hp)
        got = (loss, losses["align_loss"], losses["class_loss"],
               losses["smooth_loss"], losses["sparsity_loss"])
        names = ("loss", "align_loss", "class_loss", "smooth_loss",
                 "sparsity_loss")
        for name, g, r in zip(names, got, ref):
            assert jnp.allclose(g, r, atol=1e-5, rtol=5e-5), (case_id, name, g, r)

    # NOTE: max_t_block=128 below is test-only (to exercise the tiled path on
    # tiny shapes); the production default stays 2048 per the perf review.
    # 1) T-tiled reduction (grid=(2,)), align active, cross-block carry.
    run_case(1, batch=2, num_samples=2, t=256, epoch=5, delay_align=0,
             max_t_block=128)
    # 2) T not a multiple of 128 -> zero pad + in-kernel correction (grid=(3,)).
    run_case(2, batch=2, num_samples=2, t=300, epoch=5, delay_align=0,
             max_t_block=128)
    # 3) align disabled by delay_align, single-block path.
    run_case(3, batch=2, num_samples=2, t=256, epoch=0, delay_align=3)
    # 4) num_samples == 1 (odd row count -> zero row pad), ragged T.
    run_case(4, batch=3, num_samples=1, t=200, epoch=4, delay_align=0)

    print("KERNEL_OK")
</pallas_src>

<mosaic_0001>
module attributes {stable_mosaic.version = 11 : i64} {
  func.func @_csltal_loss_kernel(%arg0: i32, %arg1: memref<2x128xf32, #tpu.memory_space<vmem>>, %arg2: memref<2x128xf32, #tpu.memory_space<vmem>>, %arg3: memref<2x4xf32, #tpu.memory_space<vmem>>, %arg4: memref<5xf32, #tpu.memory_space<smem>>, %arg5: memref<2x128xf32, #tpu.memory_space<vmem>>, %arg6: memref<2x128xf32, #tpu.memory_space<vmem>>, %arg7: memref<2x128xf32, #tpu.memory_space<vmem>>, %arg8: memref<2x2xf32, #tpu.memory_space<vmem>>) attributes {dimension_semantics = [#tpu.dimension_semantics<arbitrary>], iteration_bounds = array<i64: 2>, scalar_prefetch = 0 : i64, scratch_operands = 4 : i64, tpu.core_type = #tpu.core_type<tc>, window_params = [{transform_indices = @transform_0, window_bounds = array<i64: 2, 128>}, {transform_indices = @transform_1, window_bounds = array<i64: 2, 128>}, {pipeline_mode = #tpu.pipeline_mode<synchronous>, transform_indices = @transform_2, window_bounds = array<i64: 2, 4>}, {transform_indices = @transform_3, window_bounds = array<i64: 5>}]} {
    %c0 = arith.constant 0 : index
    %c0_0 = arith.constant 0 : index
    %0 = vector.load %arg1[%c0, %c0_0] : memref<2x128xf32, #tpu.memory_space<vmem>>, vector<2x128xf32>
    %c0_1 = arith.constant 0 : index
    %c0_2 = arith.constant 0 : index
    %1 = vector.load %arg2[%c0_1, %c0_2] : memref<2x128xf32, #tpu.memory_space<vmem>>, vector<2x128xf32>
    %c0_i32 = arith.constant 0 : i32
    %2 = arith.cmpi eq, %arg0, %c0_i32 : i32
    %3 = arith.extui %2 : i1 to i32
    %c0_i32_3 = arith.constant 0 : i32
    %4 = arith.cmpi ne, %3, %c0_i32_3 : i32
    scf.if %4 {
      %cst = arith.constant 0.000000e+00 : f32
      %51 = vector.broadcast %cst : f32 to vector<2x128xf32>
      %c0_30 = arith.constant 0 : index
      %c0_31 = arith.constant 0 : index
      %52 = vector.load %arg5[%c0_30, %c0_31] : memref<2x128xf32, #tpu.memory_space<vmem>>, vector<2x128xf32>
      tpu.vector_store %arg5[%c0_30, %c0_31], %51 {strides = array<i32>} : memref<2x128xf32, #tpu.memory_space<vmem>>, vector<2x128xf32>,
      %cst_32 = arith.constant 0.000000e+00 : f32
      %53 = vector.broadcast %cst_32 : f32 to vector<2x128xf32>
      %c0_33 = arith.constant 0 : index
      %c0_34 = arith.constant 0 : index
      %54 = vector.load %arg6[%c0_33, %c0_34] : memref<2x128xf32, #tpu.memory_space<vmem>>, vector<2x128xf32>
      tpu.vector_store %arg6[%c0_33, %c0_34], %53 {strides = array<i32>} : memref<2x128xf32, #tpu.memory_space<vmem>>, vector<2x128xf32>,
      %cst_35 = arith.constant 0.000000e+00 : f32
      %55 = vector.broadcast %cst_35 : f32 to vector<2x128xf32>
      %c0_36 = arith.constant 0 : index
      %c0_37 = arith.constant 0 : index
      %56 = vector.load %arg7[%c0_36, %c0_37] : memref<2x128xf32, #tpu.memory_space<vmem>>, vector<2x128xf32>
      tpu.vector_store %arg7[%c0_36, %c0_37], %55 {strides = array<i32>} : memref<2x128xf32, #tpu.memory_space<vmem>>, vector<2x128xf32>,
      %57 = vector.extract_strided_slice %0 {offsets = [0, 0], sizes = [2, 1], strides = [1, 1]} : vector<2x128xf32> to vector<2x1xf32>
      %c0_38 = arith.constant 0 : index
      %c0_39 = arith.constant 0 : index
      %58 = vector.load %arg8[%c0_38, %c0_39] : memref<2x2xf32, #tpu.memory_space<vmem>>, vector<2x1xf32>
      tpu.vector_store %arg8[%c0_38, %c0_39], %57 {strides = array<i32>} : memref<2x2xf32, #tpu.memory_space<vmem>>, vector<2x1xf32>,
      %59 = vector.extract_strided_slice %1 {offsets = [0, 0], sizes = [2, 1], strides = [1, 1]} : vector<2x128xf32> to vector<2x1xf32>
      %c0_40 = arith.constant 0 : index
      %c1_41 = arith.constant 1 : index
      %60 = vector.load %arg8[%c0_40, %c1_41] : memref<2x2xf32, #tpu.memory_space<vmem>>, vector<2x1xf32>
      tpu.vector_store %arg8[%c0_40, %c1_41], %59 {strides = array<i32>} : memref<2x2xf32, #tpu.memory_space<vmem>>, vector<2x1xf32>,
    } else {
    }
    %c0_4 = arith.constant 0 : index
    %c0_5 = arith.constant 0 : index
    %5 = vector.load %arg7[%c0_4, %c0_5] : memref<2x128xf32, #tpu.memory_space<vmem>>, vector<2x128xf32>
    %6 = math.absf %0 : vector<2x128xf32>
    %7 = arith.addf %5, %6 : vector<2x128xf32>
    %8 = math.absf %1 : vector<2x128xf32>
    %9 = arith.addf %7, %8 : vector<2x128xf32>
    %c0_6 = arith.constant 0 : index
    %c0_7 = arith.constant 0 : index
    %10 = vector.load %arg7[%c0_6, %c0_7] : memref<2x128xf32, #tpu.memory_space<vmem>>, vector<2x128xf32>
    tpu.vector_store %arg7[%c0_6, %c0_7], %9 {strides = array<i32>} : memref<2x128xf32, #tpu.memory_space<vmem>>, vector<2x128xf32>,
    %c1_i32 = arith.constant 1 : i32
    %11 = tpu.dynamic_rotate %0 by %c1_i32 dim 1 : vector<2x128xf32>, i32 -> vector<2x128xf32>
    %12 = arith.subf %0, %11 : vector<2x128xf32>
    %c1_i32_8 = arith.constant 1 : i32
    %13 = tpu.dynamic_rotate %1 by %c1_i32_8 dim 1 : vector<2x128xf32>, i32 -> vector<2x128xf32>
    %14 = arith.subf %1, %13 : vector<2x128xf32>
    %c0_9 = arith.constant 0 : index
    %c0_10 = arith.constant 0 : index
    %15 = vector.load %arg6[%c0_9, %c0_10] : memref<2x128xf32, #tpu.memory_space<vmem>>, vector<2x128xf32>
    %16 = arith.mulf %12, %12 : vector<2x128xf32>
    %17 = arith.addf %15, %16 : vector<2x128xf32>
    %18 = arith.mulf %14, %14 : vector<2x128xf32>
    %19 = arith.addf %17, %18 : vector<2x128xf32>
    %c0_11 = arith.constant 0 : index
    %c0_12 = arith.constant 0 : index
    %20 = vector.load %arg6[%c0_11, %c0_12] : memref<2x128xf32, #tpu.memory_space<vmem>>, vector<2x128xf32>
    tpu.vector_store %arg6[%c0_11, %c0_12], %19 {strides = array<i32>} : memref<2x128xf32, #tpu.memory_space<vmem>>, vector<2x128xf32>,
    %21 = vector.extract_strided_slice %0 {offsets = [0, 0], sizes = [2, 1], strides = [1, 1]} : vector<2x128xf32> to vector<2x1xf32>
    %22 = vector.extract_strided_slice %0 {offsets = [0, 127], sizes = [2, 1], strides = [1, 1]} : vector<2x128xf32> to vector<2x1xf32>
    %23 = vector.extract_strided_slice %1 {offsets = [0, 0], sizes = [2, 1], strides = [1, 1]} : vector<2x128xf32> to vector<2x1xf32>
    %24 = vector.extract_strided_slice %1 {offsets = [0, 127], sizes = [2, 1], strides = [1, 1]} : vector<2x128xf32> to vector<2x1xf32>
    %c0_13 = arith.constant 0 : index
    %c0_14 = arith.constant 0 : index
    %25 = vector.load %arg8[%c0_13, %c0_14] : memref<2x2xf32, #tpu.memory_space<vmem>>, vector<2x1xf32>
    %26 = arith.subf %25, %21 : vector<2x1xf32>
    %c0_15 = arith.constant 0 : index
    %c1 = arith.constant 1 : index
    %27 = vector.load %arg8[%c0_15, %c1] : memref<2x2xf32, #tpu.memory_space<vmem>>, vector<2x1xf32>
    %28 = arith.subf %27, %23 : vector<2x1xf32>
    %29 = arith.subf %22, %21 : vector<2x1xf32>
    %30 = arith.subf %24, %23 : vector<2x1xf32>
    %c0_16 = arith.constant 0 : index
    %c0_17 = arith.constant 0 : index
    %31 = vector.load %arg6[%c0_16, %c0_17] : memref<2x128xf32, #tpu.memory_space<vmem>>, vector<2x1xf32>
    %32 = arith.mulf %26, %26 : vector<2x1xf32>
    %33 = arith.addf %31, %32 : vector<2x1xf32>
    %34 = arith.mulf %28, %28 : vector<2x1xf32>
    %35 = arith.addf %33, %34 : vector<2x1xf32>
    %36 = arith.mulf %29, %29 : vector<2x1xf32>
    %37 = arith.subf %35, %36 : vector<2x1xf32>
    %38 = arith.mulf %30, %30 : vector<2x1xf32>
    %39 = arith.subf %37, %38 : vector<2x1xf32>
    %c0_18 = arith.constant 0 : index
    %c0_19 = arith.constant 0 : index
    %40 = vector.load %arg6[%c0_18, %c0_19] : memref<2x128xf32, #tpu.memory_space<vmem>>, vector<2x1xf32>
    tpu.vector_store %arg6[%c0_18, %c0_19], %39 {strides = array<i32>} : memref<2x128xf32, #tpu.memory_space<vmem>>, vector<2x1xf32>,
    %c0_20 = arith.constant 0 : index
    %c0_21 = arith.constant 0 : index
    %41 = vector.load %arg8[%c0_20, %c0_21] : memref<2x2xf32, #tpu.memory_space<vmem>>, vector<2x1xf32>
    tpu.vector_store %arg8[%c0_20, %c0_21], %22 {strides = array<i32>} : memref<2x2xf32, #tpu.memory_space<vmem>>, vector<2x1xf32>,
    %c0_22 = arith.constant 0 : index
    %c1_23 = arith.constant 1 : index
    %42 = vector.load %arg8[%c0_22, %c1_23] : memref<2x2xf32, #tpu.memory_space<vmem>>, vector<2x1xf32>
    tpu.vector_store %arg8[%c0_22, %c1_23], %24 {strides = array<i32>} : memref<2x2xf32, #tpu.memory_space<vmem>>, vector<2x1xf32>,
    %43 = arith.subf %0, %1 : vector<2x128xf32>
    %c0_24 = arith.constant 0 : index
    %c0_25 = arith.constant 0 : index
    %44 = vector.load %arg5[%c0_24, %c0_25] : memref<2x128xf32, #tpu.memory_space<vmem>>, vector<2x128xf32>
    %45 = arith.mulf %43, %43 : vector<2x128xf32>
    %46 = arith.addf %44, %45 : vector<2x128xf32>
    %c0_26 = arith.constant 0 : index
    %c0_27 = arith.constant 0 : index
    %47 = vector.load %arg5[%c0_26, %c0_27] : memref<2x128xf32, #tpu.memory_space<vmem>>, vector<2x128xf32>
    tpu.vector_store %arg5[%c0_26, %c0_27], %46 {strides = array<i32>} : memref<2x128xf32, #tpu.memory_space<vmem>>, vector<2x128xf32>,
    %c1_i32_28 = arith.constant 1 : i32
    %48 = arith.cmpi eq, %arg0, %c1_i32_28 : i32
    %49 = arith.extui %48 : i1 to i32
    %c0_i32_29 = arith.constant 0 : i32
    %50 = arith.cmpi ne, %49, %c0_i32_29 : i32
    scf.if %50 {
      %c0_30 = arith.constant 0 : index
      %c0_31 = arith.constant 0 : index
      %51 = vector.load %arg5[%c0_30, %c0_31] : memref<2x128xf32, #tpu.memory_space<vmem>>, vector<2x128xf32>
      %52 = vector.shape_cast %51 : vector<2x128xf32> to vector<1x2x128xf32>
      %cst = arith.constant dense<0.000000e+00> : vector<1xf32>
      %53 = vector.multi_reduction <add>, %52, %cst [1, 2] : vector<1x2x128xf32> to vector<1xf32>
      %54 = vector.shape_cast %53 : vector<1xf32> to vector<1x1x1xf32>
      %55 = vector.extract %54[0, 0, 0] : f32 from vector<1x1x1xf32>
      %cst_32 = arith.constant 3.906250e-03 : f32
      %56 = arith.mulf %cst_32, %55 : f32
      %c0_33 = arith.constant 0 : index
      %c0_34 = arith.constant 0 : index
      %57 = vector.load %arg6[%c0_33, %c0_34] : memref<2x128xf32, #tpu.memory_space<vmem>>, vector<2x128xf32>
      %58 = vector.shape_cast %57 : vector<2x128xf32> to vector<1x2x128xf32>
      %cst_35 = arith.constant dense<0.000000e+00> : vector<1xf32>
      %59 = vector.multi_reduction <add>, %58, %cst_35 [1, 2] : vector<1x2x128xf32> to vector<1xf32>
      %60 = vector.shape_cast %59 : vector<1xf32> to vector<1x1x1xf32>
      %61 = vector.extract %60[0, 0, 0] : f32 from vector<1x1x1xf32>
      %cst_36 = arith.constant 1.000000e-03 : f32
      %62 = arith.mulf %cst_36, %61 : f32
      %c0_37 = arith.constant 0 : index
      %c0_38 = arith.constant 0 : index
      %63 = vector.load %arg7[%c0_37, %c0_38] : memref<2x128xf32, #tpu.memory_space<vmem>>, vector<2x128xf32>
      %64 = vector.shape_cast %63 : vector<2x128xf32> to vector<1x2x128xf32>
      %cst_39 = arith.constant dense<0.000000e+00> : vector<1xf32>
      %65 = vector.multi_reduction <add>, %64, %cst_39 [1, 2] : vector<1x2x128xf32> to vector<1xf32>
      %66 = vector.shape_cast %65 : vector<1xf32> to vector<1x1x1xf32>
      %67 = vector.extract %66[0, 0, 0] : f32 from vector<1x1x1xf32>
      %cst_40 = arith.constant 9.99999974E-5 : f32
      %68 = arith.mulf %cst_40, %67 : f32
      %c0_41 = arith.constant 0 : index
      %c0_42 = arith.constant 0 : index
      %69 = vector.load %arg3[%c0_41, %c0_42] : memref<2x4xf32, #tpu.memory_space<vmem>>, vector<2x4xf32>
      %70 = vector.extract_strided_slice %69 {offsets = [0, 0], sizes = [1, 4], strides = [1, 1]} : vector<2x4xf32> to vector<1x4xf32>
      %71 = vector.extract_strided_slice %69 {offsets = [1, 0], sizes = [1, 4], strides = [1, 1]} : vector<2x4xf32> to vector<1x4xf32>
      %72 = math.log %70 : vector<1x4xf32>
      %cst_43 = arith.constant -1.000000e+02 : f32
      %73 = vector.broadcast %cst_43 : f32 to vector<1x4xf32>
      %74 = arith.maximumf %72, %73 : vector<1x4xf32>
      %cst_44 = arith.constant 1.000000e+00 : f32
      %75 = vector.broadcast %cst_44 : f32 to vector<1x4xf32>
      %76 = arith.subf %75, %70 : vector<1x4xf32>
      %77 = math.log %76 : vector<1x4xf32>
      %cst_45 = arith.constant -1.000000e+02 : f32
      %78 = vector.broadcast %cst_45 : f32 to vector<1x4xf32>
      %79 = arith.maximumf %77, %78 : vector<1x4xf32>
      %80 = arith.mulf %71, %74 : vector<1x4xf32>
      %cst_46 = arith.constant 1.000000e+00 : f32
      %81 = vector.broadcast %cst_46 : f32 to vector<1x4xf32>
      %82 = arith.subf %81, %71 : vector<1x4xf32>
      %83 = arith.mulf %82, %79 : vector<1x4xf32>
      %84 = arith.addf %80, %83 : vector<1x4xf32>
      %85 = vector.shape_cast %84 : vector<1x4xf32> to vector<1x1x4xf32>
      %cst_47 = arith.constant dense<0.000000e+00> : vector<1xf32>
      %86 = vector.multi_reduction <add>, %85, %cst_47 [1, 2] : vector<1x1x4xf32> to vector<1xf32>
      %87 = vector.shape_cast %86 : vector<1xf32> to vector<1x1x1xf32>
      %88 = vector.extract %87[0, 0, 0] : f32 from vector<1x1x1xf32>
      %cst_48 = arith.constant 0.000000e+00 : f32
      %89 = arith.subf %cst_48, %88 : f32
      %cst_49 = arith.constant 2.500000e-01 : f32
      %90 = arith.mulf %89, %cst_49 : f32
      %91 = arith.addf %56, %90 : f32
      %92 = arith.addf %91, %62 : f32
      %93 = arith.addf %92, %68 : f32
      %cst_50 = arith.constant 2.500000e-01 : f32
      %94 = arith.mulf %93, %cst_50 : f32
      %c0_51 = arith.constant 0 : index
      %95 = memref.load %arg4[%c0_51] : memref<5xf32, #tpu.memory_space<smem>>
      memref.store %94, %arg4[%c0_51] : memref<5xf32, #tpu.memory_space<smem>>
      %c1_52 = arith.constant 1 : index
      %96 = memref.load %arg4[%c1_52] : memref<5xf32, #tpu.memory_space<smem>>
      memref.store %56, %arg4[%c1_52] : memref<5xf32, #tpu.memory_space<smem>>
      %c2 = arith.constant 2 : index
      %97 = memref.load %arg4[%c2] : memref<5xf32, #tpu.memory_space<smem>>
      memref.store %90, %arg4[%c2] : memref<5xf32, #tpu.memory_space<smem>>
      %c3 = arith.constant 3 : index
      %98 = memref.load %arg4[%c3] : memref<5xf32, #tpu.memory_space<smem>>
      memref.store %62, %arg4[%c3] : memref<5xf32, #tpu.memory_space<smem>>
      %c4 = arith.constant 4 : index
      %99 = memref.load %arg4[%c4] : memref<5xf32, #tpu.memory_space<smem>>
      memref.store %68, %arg4[%c4] : memref<5xf32, #tpu.memory_space<smem>>
    } else {
    }
    return
  }
  func.func @transform_0(%arg0: i32) -> (i32, i32) {
    %c0_i32 = arith.constant 0 : i32
    %c0_i32_0 = arith.constant 0 : i32
    return %c0_i32, %arg0 : i32, i32
  }
  func.func @transform_1(%arg0: i32) -> (i32, i32) {
    %c2_i32 = arith.constant 2 : i32
    %0 = arith.addi %arg0, %c2_i32 : i32
    %c0_i32 = arith.constant 0 : i32
    %c0_i32_0 = arith.constant 0 : i32
    return %c0_i32, %0 : i32, i32
  }
  func.func @transform_2(%arg0: i32) -> (i32, i32) {
    %c0_i32 = arith.constant 0 : i32
    %c0_i32_0 = arith.constant 0 : i32
    %c0_i32_1 = arith.constant 0 : i32
    return %c0_i32, %c0_i32_0 : i32, i32
  }
  func.func @transform_3(%arg0: i32) -> i32 {
    %c0_i32 = arith.constant 0 : i32
    %c0_i32_0 = arith.constant 0 : i32
    return %c0_i32 : i32
  }
}

</mosaic_0001>

<bundles_post_ra>
// kernel: tpu_custom_call.1
= control target key start
LH: loop header
LB: loop body
LE: loop exit
PB: predicated region body
PF: predicated region fallthrough
CT: control target
= control target key end

     0   :  { %8 = vsyncpa [#allocation7], 0  ;;  %s975_s0 = inlined_call_operand.hbm [shape: f32[2,512], index: 0, kind: input, shape index: {}]   ;;  %s976_s1 = inlined_call_operand.hbm [shape: f32[2,512], index: 1, kind: input, shape index: {}]   ;;  %s977_s2 = inlined_call_operand.vmem [shape: f32[2,4], index: 2, kind: input, shape index: {}]   ;;  %s978_s3 = inlined_call_operand.hbm [shape: f32[5], index: 3, kind: output, shape index: {}]  }
   0x1   :  { %10 = vsyncpa [#allocation7 + $0x1], 0 }
   0x2   :  { %11 = vsyncpa [#allocation10], 0 }
   0x3   :  { %13 = vsyncpa [#allocation10 + $0x1], 0 }
   0x4   :  { %14 = vsyncpa [#allocation8], 0  ;;  %s748_s12 = smov 0   ;;  %s750_s13 = smov 0  }
   0x5   :  { %s752_s14 = smov 0   ;;  %s754_s15 = smov 0  }
   0x6   :  { %s756_s16 = smov 0   ;;  %s758_s17 = smov 0  }
   0x7   :  { %s760_s18 = smov 0  }
   0x8 LB: > { %s782_s19 = sadd.s32 4294967295, %s718_s18   ;;  %s785_s20 = sadd.s32 1, %s718_s18   ;;  %s718_s18 = sphi %s760_s18, %s1002_s18   ;;  %s714_s17 = sphi %s758_s17, %s1001_s17   ;;  %s710_s16 = sphi %s756_s16, %s1000_s16   ;;  %s706_s15 = sphi %s754_s15, %s999_s15   ;;  %s702_s14 = sphi %s752_s14, %s998_s14   ;;  %s698_s13 = sphi %s750_s13, %s997_s13   ;;  %s694_s12 = sphi %s748_s12, %s996_s12  }
   0x9   : > { %s24_s21 = ssub.s32 %s718_s18, %s785_s20  ;;  %s27_s22 = sadd.s32 1, %s714_s17 }
   0xa   : > { %p25_p0 = scmp.eq.s32.totalorder %s24_s21, 0  ;;  %p34_p1 = scmp.ne.s32.totalorder %s714_s17, %s710_s16 }
   0xb   : > { %p981_p2 = scmp.eq.s32.totalorder %s718_s18, 0  ;;  %p40_p3 = scmp.ne.s32.totalorder %s710_s16, %s706_s15 }
   0xc   : > { %s795_s23 = scalar_select %p25_p0, %s714_s17, %s27_s22  }
   0xd   : > { %p36_p4 = por %p981_p2, %p34_p1  ;;  %p980_p5 = scmp.eq.s32.totalorder %s782_s19, 0 }
   0xe   : > { %p979_p6 = scmp.lt.s32.totalorder %s718_s18, 2  ;;  %s137_s25 = sand.u32 1, %s714_s17  }
   0xf   : > { %p803_p7 = por %p980_p5, %p40_p3  ;;  %s474_s26 = sshll.u32 %s137_s25, 1 }
  0x10   : > { %s475_s27 = sshll.u32 %s718_s18, 5  ;;  %s141_s4 = scalar_lea.vmem [#allocation6], %s474_s26 }
  0x11   : > { %s984_s24 = scalar_select %p803_p7, 1, 0 }
  0x12   : > { %s814_s30 = scalar_lea.hbm %s975_s0, %s475_s27  ;;  %s148_s5 = sshll.u32 %s141_s4, 4  ;;  %s816_s5 = int_to_ptr.vmem [resolvable:$true] %s148_s5 }
  0x13   : > { %p820_p8 = pnand %p979_p6, %p36_p4  ;;  %s138_s7 = scalar_lea.sflag [#allocation7], %s137_s25 }
  0x14   : > { %s579_s8 = scalar_lea.hbm %s814_s30, 32  ;;  %s584_s11 = scalar_lea.hbm %s975_s0, 128 }
  0x15   : > { %p580_p11 = scmp.ne.s32.totalorder %s814_s30, %s579_s8  ;;  %p581_p12 = pneg %p820_p8 }
  0x16   : > { %p585_p1 = scmp.lt.u32.totalorder %s814_s30, %s975_s0  ;;  %p586_p3 = scmp.lt.u32.totalorder %s584_s11, %s579_s8 }
  0x17   : > { %p582_p13 = pnand %p581_p12, %p580_p11  ;;  %p588_p6 = scmp.lt.u32.totalorder %s579_s8, %s814_s30 }
  0x18   : > { %p587_p4 = por %p586_p3, %p585_p1 }
  0x19   : > { %p583_p0 = pneg %p582_p13 }
  0x1a   : > { %p589_p5 = por %p588_p6, %p587_p4 }
  0x1c   : > { %p590_p2 = pnand %p589_p5, %p583_p0 }
  0x1e   : > { %593 = shalt.err (!%p590_p2)
}
  0x1f   : > { %s594_s22 = scalar_lea.vmem %s816_s5, 32  ;;  %s720_s25 = smov [#allocation6]  }
  0x20   : > { %p595_p11 = scmp.ne.s32.totalorder %s816_s5, %s594_s22  ;;  %s599_s26 = sshll.u32 %s720_s25, 4  ;;  %s600_s26 = int_to_ptr.vmem [resolvable:$false] %s599_s26 }
  0x21   : > { %s601_s28 = scalar_lea.vmem %s600_s26, 64  ;;  %p602_p10 = scmp.lt.s32.totalorder %s816_s5, %s600_s26 }
  0x22   : > { %p597_p13 = pnand %p595_p11, %p581_p12  ;;  %p603_p1 = scmp.lt.s32.totalorder %s601_s28, %s594_s22 }
  0x24   : > { %p598_p9 = pneg %p597_p13  ;;  %p604_p3 = por %p603_p1, %p602_p10 }
  0x26   : > { %p605_p6 = pnand %p604_p3, %p598_p9 }
  0x28   : > { %608 = shalt.err (!%p605_p6)
}
  0x29   : > { %506 = dma.hbm_to_vmem [thread:$0]  (!%p820_p8), %s814_s30, 32, %s816_s5, %s138_s7  }
  0x2a   : > { %p986_p2 = scmp.lt.s32.totalorder %s718_s18, 3  ;;  %p987_p5 = scmp.ge.s32.totalorder %s718_s18, 1 }
  0x2b   : > { %s50_s4 = sadd.s32 2, %s718_s18  ;;  %s51_s6 = sadd.s32 2, %s785_s20 }
  0x2c   : > { %p855_p9 = pnand %p987_p5, %p986_p2  ;;  %s52_s8 = ssub.s32 %s50_s4, %s51_s6 }
  0x2d   : > { %s55_s9 = sadd.s32 1, %s702_s14  ;;  %p53_p10 = scmp.eq.s32.totalorder %s52_s8, 0 }
  0x2e   : > { %p62_p12 = scmp.ne.s32.totalorder %s702_s14, %s698_s13  ;;  %p68_p0 = scmp.ne.s32.totalorder %s698_s13, %s694_s12 }
  0x2f   : > { %s155_s10 = sand.u32 1, %s702_s14   ;;  %p989_p4 = scmp.eq.s32.totalorder %s718_s18, 0 }
  0x30   : > { %s868_s11 = scalar_select %p53_p10, %s702_s14, %s55_s9  }
  0x31   : > { %p64_p11 = por %p62_p12, %p989_p4  ;;  %p990_p8 = scmp.eq.s32.totalorder %s782_s19, 0 }
  0x32   : > { %s476_s5 = sshll.u32 %s155_s10, 1  ;;  %s428_s21 = scalar_lea.hbm %s976_s1, %s475_s27 }
  0x33   : > { %p874_p13 = por %p68_p0, %p990_p8  ;;  %s883_s22 = scalar_lea.hbm %s428_s21, 64 }
  0x34   : > { %s159_s12 = scalar_lea.vmem [#allocation9], %s476_s5  ;;  %p992_p1 = scmp.lt.s32.totalorder %s718_s18, 2 }
  0x35   : > { %s991_s30 = scalar_select %p874_p13, 1, 0 }
  0x36   : > { %s167_s25 = sshll.u32 %s159_s12, 4  ;;  %p889_p3 = pnand %p992_p1, %p64_p11  ;;  %s885_s25 = int_to_ptr.vmem [resolvable:$true] %s167_s25 }
  0x37   : > { %s156_s28 = scalar_lea.sflag [#allocation10], %s155_s10  ;;  %s639_s4 = scalar_lea.hbm %s428_s21, 96 }
  0x38   : > { %p610_p6 = scmp.ne.s32.totalorder %s883_s22, %s639_s4  ;;  %p611_p2 = pneg %p889_p3 }
  0x39   : > { %s614_s8 = scalar_lea.hbm %s976_s1, 128  ;;  %p615_p12 = scmp.lt.u32.totalorder %s883_s22, %s976_s1 }
  0x3a   : > { %p612_p5 = pnand %p611_p2, %p610_p6  ;;  %p616_p0 = scmp.lt.u32.totalorder %s614_s8, %s639_s4 }
  0x3b   : > { %p618_p11 = scmp.lt.u32.totalorder %s639_s4, %s883_s22 }
  0x3c   : > { %p613_p10 = pneg %p612_p5  ;;  %p617_p4 = por %p616_p0, %p615_p12 }
  0x3e   : > { %p619_p8 = por %p618_p11, %p617_p4 }
  0x40   : > { %p620_p1 = pnand %p619_p8, %p613_p10 }
  0x42   : > { %623 = shalt.err (!%p620_p1)
}
  0x43   : > { %s624_s10 = scalar_lea.vmem %s885_s25, 32  ;;  %s721_s5 = smov [#allocation9]  }
  0x44   : > { %p625_p6 = scmp.ne.s32.totalorder %s885_s25, %s624_s10  ;;  %s629_s7 = sshll.u32 %s721_s5, 4  ;;  %s630_s7 = int_to_ptr.vmem [resolvable:$false] %s629_s7 }
  0x45   : > { %s631_s15 = scalar_lea.vmem %s630_s7, 64  ;;  %p632_p7 = scmp.lt.s32.totalorder %s885_s25, %s630_s7 }
  0x46   : > { %p627_p5 = pnand %p625_p6, %p611_p2  ;;  %p633_p12 = scmp.lt.s32.totalorder %s631_s15, %s624_s10 }
  0x48   : > { %p628_p13 = pneg %p627_p5  ;;  %p634_p0 = por %p633_p12, %p632_p7 }
  0x4a   : > { %p635_p4 = pnand %p634_p0, %p628_p13 }
  0x4c   : > { %638 = shalt.err (!%p635_p4)
}
  0x4d   : > { %509 = dma.hbm_to_vmem [thread:$0]  (!%p889_p3), %s883_s22, 32, %s885_s25, %s156_s28  }
  0x4e   : > { %176 = sbr.rel (%p855_p9) target bundleno = 696 (0x2b8), region = 32  ;;  %s178_s21 = sand.u32 (!%p855_p9), 1, %s710_s16  }
  0x4f   : > { %s479_s12 = sshll.u32 (!%p855_p9), %s178_s21, 1  ;;  %s179_s4 = scalar_lea.sflag (!%p855_p9), [#allocation7], %s178_s21 }
  0x50   : > { %s182_s27 = scalar_lea.vmem (!%p855_p9), [#allocation6], %s479_s12  ;;  %p994_p2 = scmp.ne.s32.totalorder (!%p855_p9), %s984_s24, 0 }
  0x55   : > { %681 = dma.done.wait (%p994_p2), %s179_s4, 32  }
  0x56   : > { %683 = vsyncadd (%p994_p2), %s179_s4, 4294967264  ;;  %s187_s26 = sand.u32 1, %s698_s13   ;;  %p995_p7 = scmp.ne.s32.totalorder %s991_s30, 0 }
  0x57   : > { %s480_s6 = sshll.u32 %s187_s26, 1  ;;  %s188_s8 = scalar_lea.sflag [#allocation10], %s187_s26 }
  0x58   : > { %s191_s22 = scalar_lea.vmem [#allocation9], %s480_s6 }
  0x59   : > { %685 = dma.done.wait (%p995_p7), %s188_s8, 32  }
  0x5a   : > { %687 = vsyncadd (%p995_p7), %s188_s8, 4294967264  ;;  %v215_v0 = vld [vmem:[%s182_s27] sm:$0x3]  ;;  %v216_v1 = vld [vmem:[%s191_s22] sm:$0x3]  ;;  %p481_p9 = scmp.ne.s32.totalorder %s782_s19, 0 }
  0x5b   : > { %vm224_vm0 = vcmask (!%p481_p9), 1024   ;;  %v722_v2 = vmov (!%p481_p9), 0.0   ;;  %s723_s24 = smov (!%p481_p9), 1   ;;  %vm230_vm1 = vcmask (!%p481_p9), 9224  }
  0x5c   : > { %220 = sbr.rel (%p481_p9) target bundleno = 208 (0xd0), region = 44  ;;  %221 = vst [vmem:[#allocation2] sm:$0x3] (!%p481_p9), %v722_v2  ;;  %222 = vst [vmem:[#allocation3] sm:$0x3] (!%p481_p9), %v722_v2  ;;  %227 = vrot.lane.b32.xlu0 (!%p481_p9), %v216_v1, %s723_s24 }
  0x5d   : > { %223 = vst [vmem:[#allocation4] sm:$0x3] (!%p481_p9), %v722_v2  ;;  %225 = vst.msk [vmem:[#allocation5] sm:$0x3] (!%p481_p9), %vm224_vm0, %v215_v0 }
  0xce   : > { %v228_v3 = vpop.permute.xlu0 %227 }
  0xcf   : > { %231 = vst.msk [vmem:[#allocation5] sm:$0x3] %vm230_vm1, %v228_v3 }
  0xd0 PF: > { %s724_s29 = smov 1   ;;  %s725_s30 = smov 127   ;;  %v233_v4 = vand.u32 2147483647, %v215_v0  ;;  %v298_v5 = vsub.f32 %v215_v0, %v216_v1  ;;  %v235_v8 = vand.u32 2147483647, %v216_v1 }
  0xd1   : > { %253 = vrot.lane.b32.xlu0 %v216_v1, %s724_s29  ;;  %262 = vrot.lane.b32.xlu1 %v216_v1, %s725_s30  ;;  %v232_v6 = vld [vmem:[#allocation4] sm:$0x3]  ;;  %v299_v11 = vld [vmem:[#allocation2] sm:$0x3]  ;;  %v244_v24 = vld [vmem:[#allocation3] sm:$0x3] }
  0xd2   : > { %v234_v7 = vadd.f32 %v233_v4, %v232_v6  ;;  %v300_v9 = vmul.f32 %v298_v5, %v298_v5  ;;  %s726_s25 = smov 2   ;;  %vm287_vm2 = vcmask 1024   ;;  %vm296_vm3 = vcmask 9224   ;;  %p482_p13 = scmp.ne.s32.totalorder %s782_s19, 1 }
  0xd3   : > { %vm308_vm4 = vcmask (!%p482_p13), 1041408   ;;  %v344_v49 = vld [vmem:[%s977_s2] sm:$0x3] (!%p482_p13)  ;;  %vm364_vm5 = vcmask (!%p482_p13), 24576  }
  0xd4   : > { %v236_v12 = vadd.f32 %v235_v8, %v234_v7  ;;  %v301_v13 = vadd.f32 %v300_v9, %v299_v11  ;;  %575 = vlog2.f32 (!%p482_p13), %v344_v49  ;;  %v348_v50 = vsub.f32 (!%p482_p13), 1.0, %v344_v49 }
  0xd5   : > { %258 = vrot.lane.b32.xlu0 %v215_v0, %s725_s30  ;;  %238 = vrot.lane.b32.xlu1 %v215_v0, %s724_s29 }
  0xd6   : > { %v250_v10 = vld [vmem:[#allocation5] sm:$0x3]  ;;  %237 = vst [vmem:[#allocation4] sm:$0x3] %v236_v12  ;;  %302 = vst [vmem:[#allocation2] sm:$0x3] %v301_v13  ;;  %577 = vlog2.f32 (!%p482_p13), %v348_v50 }
  0xd7   : > { %v251_v32 = vsub.f32 %v250_v10, %v215_v0 }
  0xd9   : > { %241 = vrot.lane.b32.xlu0 %v216_v1, %s724_s29  ;;  %v267_v33 = vmul.f32 %v251_v32, %v251_v32 }
  0xdd   : > { %v307_v44 = vld [vmem:[#allocation2] sm:$0x3] (!%p482_p13)  ;;  %v332_v45 = vld [vmem:[#allocation4] sm:$0x3] (!%p482_p13) }
  0xde   : > { %v309_v46 = vsel (!%p482_p13), %vm308_vm4, %v307_v44, 0.0  ;;  %v333_v47 = vsel (!%p482_p13), %vm308_vm4, %v332_v45, 0.0  ;;  %v576_v52 = vpop.eup (!%p482_p13), %575 }
  0xdf   : > { %v346_v53 = vmul.f32 (!%p482_p13), 0.6931472, %v576_v52 }
  0xe0   : > { %v578_v54 = vpop.eup (!%p482_p13), %577 }
  0xe1   : > { %v347_v55 = vmax.f32 (!%p482_p13), %v346_v53, -100.0  ;;  %v350_v56 = vmul.f32 (!%p482_p13), 0.6931472, %v578_v54 }
  0xe3   : > { %v351_v57 = vmax.f32 (!%p482_p13), %v350_v56, -100.0  ;;  %v353_v58 = vrot.slane (!%p482_p13), %v347_v55, 7 }
  0xe5   : > { %v355_v59 = vmul.f32 (!%p482_p13), %v353_v58, %v344_v49  ;;  %v357_v60 = vrot.slane (!%p482_p13), %v351_v57, 7 }
  0xe7   : > { %v359_v61 = vmul.f32 (!%p482_p13), %v357_v60, %v348_v50 }
  0xe9   : > { %v360_v62 = vadd.f32 (!%p482_p13), %v359_v61, %v355_v59 }
  0xeb   : > { %v362_v63 = vrot.slane (!%p482_p13), %v360_v62, 1 }
 0x143   : > { %v254_v14 = vpop.permute.xlu0 %253  ;;  %v263_v15 = vpop.permute.xlu1 %262 }
 0x144   : > { %v256_v16 = vsub.f32 %v250_v10, %v254_v14  ;;  %v265_v17 = vsub.f32 %v216_v1, %v263_v15 }
 0x146   : > { %v269_v18 = vmul.f32 %v256_v16, %v256_v16  ;;  %v281_v22 = vmul.f32 %v265_v17, %v265_v17 }
 0x147   : > { %v259_v19 = vpop.permute.xlu0 %258  ;;  %v239_v20 = vpop.permute.xlu1 %238 }
 0x148   : > { %v261_v21 = vsub.f32 %v215_v0, %v259_v19  ;;  %271 = vrot.lane.b32.xlu1 %v269_v18, %s725_s30  ;;  %v240_v23 = vsub.f32 %v215_v0, %v239_v20 }
 0x14a   : > { %v275_v25 = vmul.f32 %v261_v21, %v261_v21  ;;  %v245_v26 = vmul.f32 %v240_v23, %v240_v23 }
 0x14b   : > { %v242_v27 = vpop.permute.xlu0 %241 }
 0x14c   : > { %277 = vrot.lane.b32.xlu0 %v275_v25, %s724_s29  ;;  %283 = vrot.lane.b32.xlu1 %v281_v22, %s724_s29  ;;  %v246_v28 = vadd.f32 %v245_v26, %v244_v24  ;;  %v243_v29 = vsub.f32 %v216_v1, %v242_v27 }
 0x14e   : > { %v247_v30 = vmul.f32 %v243_v29, %v243_v29 }
 0x150   : > { %289 = vrot.lane.b32.xlu0 %v215_v0, %s724_s29  ;;  %293 = vrot.lane.b32.xlu1 %v216_v1, %s726_s25  ;;  %v248_v31 = vadd.f32 %v247_v30, %v246_v28  ;;  %v365_v0 = vsel (!%p482_p13), %vm364_vm5, %v362_v63, 0.0 }
 0x152   : > { %249 = vst [vmem:[#allocation3] sm:$0x3] %v248_v31 }
 0x159   : > { %v266_v34 = vld [vmem:[#allocation3] sm:$0x3] }
 0x15a   : > { %v268_v35 = vadd.f32 %v267_v33, %v266_v34 }
 0x16f   : > { %310 = vadd.xlane.f32.xlu0 (!%p482_p13), %v309_v46 }
 0x174   : > { %334 = vadd.xlane.f32.xlu1 (!%p482_p13), %v333_v47 }
 0x178   : > { %366 = vadd.xlane.f32.xlu1 (!%p482_p13), %v365_v0 }
 0x1ba   : > { %v272_v36 = vpop.permute.xlu1 %271 }
 0x1bb   : > { %v274_v37 = vadd.f32 %v272_v36, %v268_v35 }
 0x1be   : > { %v278_v38 = vpop.permute.xlu0 %277  ;;  %v284_v39 = vpop.permute.xlu1 %283  ;;  %306 = sbr.rel (%p482_p13) target bundleno = 681 (0x2a9), region = 48 }
 0x1bf   : > { %v280_v40 = vsub.f32 %v274_v37, %v278_v38 }
 0x1c1   : > { %v286_v41 = vsub.f32 %v280_v40, %v284_v39 }
 0x1c2   : > { %v290_v42 = vpop.permute.xlu0 %289  ;;  %v294_v43 = vpop.permute.xlu1 %293 }
 0x1c3   : > { %288 = vst.msk [vmem:[#allocation3] sm:$0x3] %vm287_vm2, %v286_v41  ;;  %292 = vst.msk [vmem:[#allocation5] sm:$0x3] %vm287_vm2, %v290_v42 }
 0x1c4   : > { %297 = vst.msk [vmem:[#allocation5] sm:$0x3] %vm296_vm3, %v294_v43 }
 0x1ca   : > { %v320_v48 = vld [vmem:[#allocation3] sm:$0x3] }
 0x1cb   : > { %v321_v51 = vsel %vm308_vm4, %v320_v48, 0.0 }
 0x1cc   : > { %322 = vadd.xlane.f32.xlu0 %v321_v51 }
 0x1fc   : > { %v311_v1 = vpop.xlane.xlu0 %310 }
 0x1fd   : > { %v312_v3 = vrot.slane %v311_v1, 4 }
 0x1ff   : > { %v313_v5 = vadd.f32 %v312_v3, %v311_v1 }
 0x201   : > { %v335_v2 = vpop.xlane.xlu1 %334  ;;  %v314_v8 = vrot.slane %v313_v5, 2 }
 0x202   : > { %v336_v4 = vrot.slane %v335_v2, 4 }
 0x203   : > { %v315_v12 = vadd.f32 %v314_v8, %v313_v5 }
 0x204   : > { %v337_v6 = vadd.f32 %v336_v4, %v335_v2 }
 0x205   : > { %v316_v15 = vrot.slane %v315_v12, 1  ;;  %v367_v22 = vpop.xlane.xlu1 %366 }
 0x206   : > { %v338_v9 = vrot.slane %v337_v6, 2  ;;  %v368_v23 = vrot.slane %v367_v22, 4 }
 0x207   : > { %v317_v18 = vadd.f32 %v316_v15, %v315_v12 }
 0x208   : > { %v339_v13 = vadd.f32 %v338_v9, %v337_v6  ;;  %v369_v24 = vadd.f32 %v368_v23, %v367_v22 }
 0x209   : > { %487 = vpush %v317_v18 }
 0x20a   : > { %v340_v16 = vrot.slane %v339_v13, 1  ;;  %v370_v25 = vrot.slane %v369_v24, 2 }
 0x20c   : > { %v341_v20 = vadd.f32 %v340_v16, %v339_v13  ;;  %v371_v26 = vadd.f32 %v370_v25, %v369_v24 }
 0x20e   : > { %v372_v27 = vrot.slane %v371_v26, 1 }
 0x210   : > { %v373_v28 = vadd.f32 %v372_v27, %v371_v26 }
 0x23a   : > { %s488_s9 = spop %487 }
 0x23b   : > { %s319_s10 = smul.f32 0.00390625, %s488_s9 }
 0x23d   : > { %384 = sst [smem:[#allocation11 + $0x1]] %s319_s10 }
 0x259   : > { %v323_v7 = vpop.xlane.xlu0 %322 }
 0x25a   : > { %v324_v10 = vrot.slane %v323_v7, 4 }
 0x25c   : > { %v325_v11 = vadd.f32 %v324_v10, %v323_v7 }
 0x25e   : > { %v326_v14 = vrot.slane %v325_v11, 2 }
 0x260   : > { %v327_v17 = vadd.f32 %v326_v14, %v325_v11 }
 0x262   : > { %v328_v19 = vrot.slane %v327_v17, 1 }
 0x264   : > { %v329_v21 = vadd.f32 %v328_v19, %v327_v17 }
 0x266   : > { %489 = vpush %v329_v21 }
 0x267   : > { %491 = vpush %v341_v20 }
 0x268   : > { %493 = vpush %v373_v28 }
 0x297   : > { %s490_s5 = spop %489 }
 0x298   : > { %s331_s7 = smul.f32 0.001, %s490_s5  ;;  %s492_s15 = spop %491 }
 0x299   : > { %s343_s21 = smul.f32 0.0001, %s492_s15  ;;  %s494_s12 = spop %493 }
 0x29a   : > { %388 = sst [smem:[#allocation11 + $0x3]] %s331_s7 }
 0x29b   : > { %390 = sst [smem:[#allocation11 + $0x4]] %s343_s21 }
 0x29c   : > { %s375_s4 = ssub.f32 0.0, %s494_s12 }
 0x29e   : > { %s376_s27 = smul.f32 0.25, %s375_s4 }
 0x2a0   : > { %s377_s26 = sadd.f32 %s376_s27, %s319_s10 }
 0x2a1   : > { %386 = sst [smem:[#allocation11 + $0x2]] %s376_s27 }
 0x2a2   : > { %s378_s6 = sadd.f32 %s377_s26, %s331_s7 }
 0x2a4   : > { %s379_s8 = sadd.f32 %s378_s6, %s343_s21 }
 0x2a6   : > { %s380_s22 = smul.f32 0.25, %s379_s8 }
 0x2a8   : > { %382 = sst [smem:[#allocation11]] %s380_s22 }
 0x2a9 PF: > { %p511_p3 = scmp.eq.s32.totalorder %s782_s19, 1  ;;  %s640_s30 = scalar_lea.hbm %s978_s3, 16 }
 0x2aa   : > { %p641_p10 = scmp.ne.s32.totalorder %s978_s3, %s640_s30  ;;  %p646_p1 = scmp.lt.u32.totalorder %s640_s30, %s978_s3 }
 0x2ac   : > { %p642_p11 = pnand %p641_p10, %p511_p3 }
 0x2ae   : > { %p643_p8 = pneg %p642_p11 }
 0x2b0   : > { %p648_p6 = pnand %p646_p1, %p643_p8 }
 0x2b2   : > { %651 = shalt.err (!%p648_p6)
}
 0x2b3   : > { %s727_s10 = smov [#allocation11]  }
 0x2b4   : > { %500 = dma.smem_to_hbm (%p511_p3), %s727_s10, 16, %s978_s3, [#allocation8]  }
 0x2b5   : > { %689 = dma.done.wait (%p511_p3), [#allocation8], 16  }
 0x2b6   : > { %691 = vsyncadd (%p511_p3), [#allocation8], 4294967280 }
 0x2b7   : > { %404 = sfence }
 0x2b8 PF: > { %p17_p5 = scmp.ge.s32.totalorder %s785_s20, 4   ;;  %s996_s12 = smov %s698_s13 }
 0x2b9   : > { %s997_s13 = smov %s702_s14  ;;  %s998_s14 = smov %s868_s11 }
 0x2ba   : > { %s999_s15 = smov %s710_s16  ;;  %s1000_s16 = smov %s714_s17 }
 0x2bb   : > { %s1001_s17 = smov %s795_s23  ;;  %s1002_s18 = smov %s785_s20 }
 0x2bc   :  { %19 = sbr.rel (!%p17_p5) target bundleno = 8 (0x8), region = 95 }
 0x2c3   :  { %410 = vsyncpa [#allocation7], 1 }
 0x2c4   :  { %412 = vsyncpa [#allocation7 + $0x1], 1 }
 0x2c5   :  { %413 = vsyncpa [#allocation10], 1 }
 0x2c6   :  { %415 = vsyncpa [#allocation10 + $0x1], 1 }
 0x2c7   :  { %416 = vsyncpa [#allocation8], 1 }
 0x2c8   :  { %418 = vsyncpa [#allocation8 + $0x1], 1 }

</bundles_post_ra>
